<compile_context>
chip_gen: v6e
topology: v6e:2x2x1
jax: 0.10.0
libtpu: 0.0.40
codegen_flags: <defaults>
</compile_context>

<pallas_src>
import functools
import math

import jax
import jax.numpy as jnp
from jax.experimental import pallas as pl
from jax.experimental.pallas import tpu as pltpu


def _round_up(x, m):
    return ((x + m - 1) // m) * m


def _default_tile_q():
    """256-tall query tiles feed v6e/v7x's 256x256 MXUs; v5e's 4x 128x128 MXUs map at 128."""
    try:
        kind = jax.devices()[0].device_kind.lower()
    except Exception:
        return 128
    return 256 if ("v6" in kind or "v7" in kind) else 128


def _resident_spec(shape):
    """Block with a constant index_map (resident across grid steps).

    Single-buffered when the installed JAX supports pipeline_mode (a block that never
    changes needs no second buffer -- v7x VMEM headroom); otherwise falls back to the
    default double-buffered spec.
    """
    index_map = lambda i: (0,) * len(shape)
    try:
        return pl.BlockSpec(shape, index_map, pipeline_mode=pl.Buffered(1))
    except (TypeError, AttributeError):
        return pl.BlockSpec(shape, index_map)


def mha_kernel(q_ref, k_ref, v_ref, m_ref, wv_ref, mask_ref, out_ref):
    """One query-row tile of the (buggy-by-spec) attention forward.

    q_ref   : (TQ, Dk)  padded query rows (ones column at D_in folds the biases in)
    k_ref   : (P,  Dk)  padded key rows, resident across grid steps
    v_ref   : (TQ, Dk)  padded value rows for this tile (output is row-aligned elementwise)
    m_ref   : (Dk, Dk)  M = Wq_scaled(+bias row) @ Wk(+bias row)^T (score bilinear form)
    wv_ref  : (Dk, P)   value projection (+bias row), hidden padded to P
    mask_ref: (1,  P)   additive key-column mask: 0 on valid columns, -1e30 on padding
    out_ref : (TQ, P)   lane-dense padded output tile
    """
    mm_dtype = q_ref.dtype  # matmul-input dtype (bf16 or f32); accumulation is always f32

    # scores = (q_pad @ M) @ k_pad^T.  The tiny (TQ,Dk)x(Dk,Dk) transform replaces the old
    # per-tile full-K projection; K^T is never materialized (contract last axes of both).
    qm = jnp.dot(q_ref[...], m_ref[...], preferred_element_type=jnp.float32)
    scores = jax.lax.dot_general(
        qm.astype(mm_dtype), k_ref[...],
        dimension_numbers=(((1,), (1,)), ((), ())),
        preferred_element_type=jnp.float32)                      # (TQ, P), already /sqrt(H)

    # Padded key rows carry the folded K bias (ones column), so this additive mask is
    # load-bearing for correctness -- do not drop it.
    scores = scores + mask_ref[...]

    # TODO(synk): nn.Dropout(0.1) on the scores is identity in eval mode; training-mode
    #             (pre-softmax) dropout is not implemented.

    # Numerically stable softmax along the key axis; reciprocal runs on the EUP slot.
    row_max = jnp.max(scores, axis=-1, keepdims=True)
    e = jnp.exp(scores - row_max)
    recip = pl.reciprocal(jnp.sum(e, axis=-1, keepdims=True), approx=True)

    # Value projection for this row tile (each value row is projected exactly once overall).
    v = jnp.dot(v_ref[...], wv_ref[...], preferred_element_type=jnp.float32)   # (TQ, P)

    # output = softmax(scores) * V, ELEMENTWISE as in the PyTorch forward.  Fused epilogue:
    # the (TQ, P) `weights` array never materializes.
    out_ref[...] = ((e * v) * recip).astype(out_ref.dtype)


def make_mha(params, *, seq_len, compute_dtype=jnp.bfloat16, tile_q=None):
    """Build a jitted forward for one MultiHeadAttention instance.

    params: dict Wq,bq,Wk,bk,Wv,bv with W* already transposed to (input_dim, hidden_dim),
            i.e. x @ W == x @ torch_weight.T.
    """
    D_in, H = params["Wq"].shape
    S = int(seq_len)
    assert S == H, "elementwise `weights * value` in the reference requires seq_len == hidden_dim"

    if tile_q is None:
        tile_q = _default_tile_q()
    P0 = _round_up(max(S, H), 128)      # lane-dense padded seq / hidden dim (shared value)
    TQ = min(tile_q, P0)
    P = _round_up(P0, TQ)               # P % TQ == 0 (256-multiples on v6e/v7x when P >= 256)
    Dk = _round_up(D_in + 1, 8)         # keep the small feature dim small; +1 col for the bias

    # ---- packed ONCE per module instance (not per call) -----------------------------------
    scale = 1.0 / math.sqrt(H)          # fold 1/sqrt(hidden_dim) into the Q side of M (free)
    wq = (jnp.zeros((Dk, H), jnp.float32)
          .at[:D_in, :].set(params["Wq"] * scale)
          .at[D_in, :].set(params["bq"].reshape(-1) * scale))
    wk = (jnp.zeros((Dk, H), jnp.float32)
          .at[:D_in, :].set(params["Wk"])
          .at[D_in, :].set(params["bk"].reshape(-1)))
    m_mat = (wq @ wk.T).astype(compute_dtype)                    # (Dk, Dk)
    wv = ((jnp.zeros((Dk, P), jnp.float32)
           .at[:D_in, :H].set(params["Wv"])
           .at[D_in, :H].set(params["bv"].reshape(-1)))
          .astype(compute_dtype))                                # (Dk, P)
    mask = jnp.where(jnp.arange(P) < S, 0.0, -1e30).astype(jnp.float32).reshape(1, P)

    kernel = pl.pallas_call(
        mha_kernel,
        out_shape=jax.ShapeDtypeStruct((P, P), jnp.float32),
        grid=(P // TQ,),
        in_specs=[
            pl.BlockSpec((TQ, Dk), lambda i: (i, 0)),   # query rows: tiled + pipelined
            _resident_spec((P, Dk)),                    # key rows: resident across tiles
            pl.BlockSpec((TQ, Dk), lambda i: (i, 0)),   # value rows: tiled (row-aligned output)
            _resident_spec((Dk, Dk)),                   # M (scaled QK bilinear form, bias folded)
            _resident_spec((Dk, P)),                    # Wv (+ folded bias row)
            _resident_spec((1, P)),                     # additive key-column mask
        ],
        out_specs=pl.BlockSpec((TQ, P), lambda i: (i, 0)),
        compiler_params=pltpu.CompilerParams(
            dimension_semantics=("parallel",),          # megacore / v7x 2-TC sharding is safe:
                                                        # no cross-step state, no pid==0 hoist
            vmem_limit_bytes=64 * 1024 * 1024,          # explicit budget; valid on all gens
        ),
    )

    def _pad(x):
        xp = jnp.zeros((P, Dk), jnp.float32)
        xp = xp.at[:S, :D_in].set(x)
        xp = xp.at[:, D_in].set(1.0)                    # ones column folds the biases into matmuls
        return xp.astype(compute_dtype)

    @jax.jit
    def _fwd_impl(query, key, value, m_mat, wv, mask):
        out_padded = kernel(_pad(query), _pad(key), _pad(value), m_mat, wv, mask)
        return out_padded[:S, :H]

    def fwd(query, key, value):
        return _fwd_impl(query, key, value, m_mat, wv, mask)

    return fwd


def init_params(key, input_dim, hidden_dim):
    """Deterministic synthetic init (PyTorch-Linear-like uniform bound)."""
    ks = jax.random.split(key, 6)
    bound = 1.0 / math.sqrt(input_dim)
    u = lambda k, shape: jax.random.uniform(k, shape, jnp.float32, -bound, bound)
    # Stored already transposed: x @ W == x @ (torch_weight.T)
    return {
        "Wq": u(ks[0], (input_dim, hidden_dim)), "bq": u(ks[1], (1, hidden_dim)),
        "Wk": u(ks[2], (input_dim, hidden_dim)), "bk": u(ks[3], (1, hidden_dim)),
        "Wv": u(ks[4], (input_dim, hidden_dim)), "bv": u(ks[5], (1, hidden_dim)),
    }


def reference(query, key, value, params, hidden_dim):
    q = query @ params["Wq"] + params["bq"]
    k = key @ params["Wk"] + params["bk"]
    v = value @ params["Wv"] + params["bv"]
    scores = (q @ k.T) / math.sqrt(hidden_dim)
    weights = jax.nn.softmax(scores, axis=-1)
    return weights * v


if __name__ == "__main__":
    input_dim, hidden_dim, num_heads = 16, 8, 2  # num_heads is unused by the reference forward
    seq_len = hidden_dim  # required for the elementwise `weights * value` broadcast

    root = jax.random.PRNGKey(0)
    kq, kk, kv, kp = jax.random.split(root, 4)
    query = jax.random.normal(kq, (seq_len, input_dim), jnp.float32)
    key_x = jax.random.normal(kk, (seq_len, input_dim), jnp.float32)
    value = jax.random.normal(kv, (seq_len, input_dim), jnp.float32)
    params = init_params(kp, input_dim, hidden_dim)

    ref = reference(query, key_x, value, params, hidden_dim)

    # f32 matmul path (tight check; approx reciprocal in the softmax denominator).
    fwd_f32 = make_mha(params, seq_len=seq_len, compute_dtype=jnp.float32)
    out_f32 = jax.block_until_ready(fwd_f32(query, key_x, value))
    assert out_f32.shape == (seq_len, hidden_dim)
    assert jnp.allclose(out_f32, ref, atol=1e-3, rtol=1e-3), "f32 kernel mismatch vs JAX reference"

    # bf16 matmul-input path (MXU-native on v5e/v6e/v7x; softmax & accumulation stay f32).
    fwd_bf16 = make_mha(params, seq_len=seq_len, compute_dtype=jnp.bfloat16)
    out_bf16 = jax.block_until_ready(fwd_bf16(query, key_x, value))
    assert out_bf16.shape == (seq_len, hidden_dim)
    assert jnp.allclose(out_bf16, ref, atol=5e-2, rtol=5e-2), "bf16 kernel mismatch vs JAX reference"

    print("KERNEL_OK")
</pallas_src>

<mosaic_0001>
module attributes {stable_mosaic.version = 11 : i64} {
  func.func @mha_kernel(%arg0: i32, %arg1: memref<128x24xf32, #tpu.memory_space<vmem>>, %arg2: memref<128x24xf32, #tpu.memory_space<vmem>>, %arg3: memref<128x24xf32, #tpu.memory_space<vmem>>, %arg4: memref<24x24xf32, #tpu.memory_space<vmem>>, %arg5: memref<24x128xf32, #tpu.memory_space<vmem>>, %arg6: memref<1x128xf32, #tpu.memory_space<vmem>>, %arg7: memref<128x128xf32, #tpu.memory_space<vmem>>) attributes {dimension_semantics = [#tpu.dimension_semantics<parallel>], iteration_bounds = array<i64: 1>, scalar_prefetch = 0 : i64, scratch_operands = 0 : i64, tpu.core_type = #tpu.core_type<tc>, window_params = [{transform_indices = @transform_0, window_bounds = array<i64: 128, 24>}, {pipeline_mode = #tpu.pipeline_mode<synchronous>, transform_indices = @transform_1, window_bounds = array<i64: 128, 24>}, {transform_indices = @transform_2, window_bounds = array<i64: 128, 24>}, {pipeline_mode = #tpu.pipeline_mode<synchronous>, transform_indices = @transform_3, window_bounds = array<i64: 24, 24>}, {pipeline_mode = #tpu.pipeline_mode<synchronous>, transform_indices = @transform_4, window_bounds = array<i64: 24, 128>}, {pipeline_mode = #tpu.pipeline_mode<synchronous>, transform_indices = @transform_5, window_bounds = array<i64: 1, 128>}, {transform_indices = @transform_6, window_bounds = array<i64: 128, 128>}]} {
    %c0 = arith.constant 0 : index
    %c0_0 = arith.constant 0 : index
    %0 = vector.load %arg1[%c0, %c0_0] : memref<128x24xf32, #tpu.memory_space<vmem>>, vector<128x24xf32>
    %c0_1 = arith.constant 0 : index
    %c0_2 = arith.constant 0 : index
    %1 = vector.load %arg4[%c0_1, %c0_2] : memref<24x24xf32, #tpu.memory_space<vmem>>, vector<24x24xf32>
    %cst = arith.constant dense<0.000000e+00> : vector<128x24xf32>
    %2 = tpu.matmul %0, %1, %cst {dimension_numbers = #tpu.dot_dimension_numbers<[1], [0], [0], [1], [0, 0, 1, 1], [], []>} : vector<128x24xf32>, vector<24x24xf32>, vector<128x24xf32> -> vector<128x24xf32>
    %c0_3 = arith.constant 0 : index
    %c0_4 = arith.constant 0 : index
    %3 = vector.load %arg2[%c0_3, %c0_4] : memref<128x24xf32, #tpu.memory_space<vmem>>, vector<128x24xf32>
    %cst_5 = arith.constant dense<0.000000e+00> : vector<128x128xf32>
    %4 = tpu.matmul %2, %3, %cst_5 {dimension_numbers = #tpu.dot_dimension_numbers<[1], [1], [0], [0], [0, 0, 1, 0], [], []>} : vector<128x24xf32>, vector<128x24xf32>, vector<128x128xf32> -> vector<128x128xf32>
    %c0_6 = arith.constant 0 : index
    %c0_7 = arith.constant 0 : index
    %5 = vector.load %arg6[%c0_6, %c0_7] : memref<1x128xf32, #tpu.memory_space<vmem>>, vector<1x128xf32>
    %6 = vector.broadcast %5 : vector<1x128xf32> to vector<128x128xf32>
    %7 = arith.addf %4, %6 : vector<128x128xf32>
    %cst_8 = arith.constant dense<0xFF800000> : vector<128xf32>
    %8 = vector.multi_reduction <maximumf>, %7, %cst_8 [1] : vector<128x128xf32> to vector<128xf32>
    %9 = vector.shape_cast %8 : vector<128xf32> to vector<128x1xf32>
    %10 = vector.broadcast %9 : vector<128x1xf32> to vector<128x128xf32>
    %11 = arith.subf %7, %10 : vector<128x128xf32>
    %12 = math.exp %11 : vector<128x128xf32>
    %cst_9 = arith.constant dense<0.000000e+00> : vector<128xf32>
    %13 = vector.multi_reduction <add>, %12, %cst_9 [1] : vector<128x128xf32> to vector<128xf32>
    %14 = vector.shape_cast %13 : vector<128xf32> to vector<128x1xf32>
    %15 = tpu.reciprocal %14 {approx = true} : vector<128x1xf32> -> vector<128x1xf32>
    %c0_10 = arith.constant 0 : index
    %c0_11 = arith.constant 0 : index
    %16 = vector.load %arg3[%c0_10, %c0_11] : memref<128x24xf32, #tpu.memory_space<vmem>>, vector<128x24xf32>
    %c0_12 = arith.constant 0 : index
    %c0_13 = arith.constant 0 : index
    %17 = vector.load %arg5[%c0_12, %c0_13] : memref<24x128xf32, #tpu.memory_space<vmem>>, vector<24x128xf32>
    %cst_14 = arith.constant dense<0.000000e+00> : vector<128x128xf32>
    %18 = tpu.matmul %16, %17, %cst_14 {dimension_numbers = #tpu.dot_dimension_numbers<[1], [0], [0], [1], [0, 0, 1, 1], [], []>} : vector<128x24xf32>, vector<24x128xf32>, vector<128x128xf32> -> vector<128x128xf32>
    %19 = arith.mulf %12, %18 : vector<128x128xf32>
    %20 = vector.broadcast %15 : vector<128x1xf32> to vector<128x128xf32>
    %21 = arith.mulf %19, %20 : vector<128x128xf32>
    %c0_15 = arith.constant 0 : index
    %c0_16 = arith.constant 0 : index
    %22 = vector.load %arg7[%c0_15, %c0_16] : memref<128x128xf32, #tpu.memory_space<vmem>>, vector<128x128xf32>
    tpu.vector_store %arg7[%c0_15, %c0_16], %21 {strides = array<i32>} : memref<128x128xf32, #tpu.memory_space<vmem>>, vector<128x128xf32>,
    return
  }
  func.func @transform_0(%arg0: i32) -> (i32, i32) {
    %c0_i32 = arith.constant 0 : i32
    %c0_i32_0 = arith.constant 0 : i32
    return %arg0, %c0_i32 : i32, i32
  }
  func.func @transform_1(%arg0: i32) -> (i32, i32) {
    %c0_i32 = arith.constant 0 : i32
    %c0_i32_0 = arith.constant 0 : i32
    %c0_i32_1 = arith.constant 0 : i32
    return %c0_i32, %c0_i32_0 : i32, i32
  }
  func.func @transform_2(%arg0: i32) -> (i32, i32) {
    %c0_i32 = arith.constant 0 : i32
    %c0_i32_0 = arith.constant 0 : i32
    return %arg0, %c0_i32 : i32, i32
  }
  func.func @transform_3(%arg0: i32) -> (i32, i32) {
    %c0_i32 = arith.constant 0 : i32
    %c0_i32_0 = arith.constant 0 : i32
    %c0_i32_1 = arith.constant 0 : i32
    return %c0_i32, %c0_i32_0 : i32, i32
  }
  func.func @transform_4(%arg0: i32) -> (i32, i32) {
    %c0_i32 = arith.constant 0 : i32
    %c0_i32_0 = arith.constant 0 : i32
    %c0_i32_1 = arith.constant 0 : i32
    return %c0_i32, %c0_i32_0 : i32, i32
  }
  func.func @transform_5(%arg0: i32) -> (i32, i32) {
    %c0_i32 = arith.constant 0 : i32
    %c0_i32_0 = arith.constant 0 : i32
    %c0_i32_1 = arith.constant 0 : i32
    return %c0_i32, %c0_i32_0 : i32, i32
  }
  func.func @transform_6(%arg0: i32) -> (i32, i32) {
    %c0_i32 = arith.constant 0 : i32
    %c0_i32_0 = arith.constant 0 : i32
    return %arg0, %c0_i32 : i32, i32
  }
}

</mosaic_0001>

<bundles_post_ra>
// kernel: _fwd_impl.1
= control target key start
LH: loop header
LB: loop body
LE: loop exit
PB: predicated region body
PF: predicated region fallthrough
CT: control target
= control target key end

     0   :  { %vm42_vm0 = vcmask 195584   ;;  %s1623_s3 = inlined_call_operand.vmem [shape: f32[24,24], index: 3, kind: input, shape index: {}]   ;;  %s1624_s0 = inlined_call_operand.vmem [shape: f32[128,24], index: 0, kind: input, shape index: {}]   ;;  %s1625_s1 = inlined_call_operand.vmem [shape: f32[128,24], index: 1, kind: input, shape index: {}]   ;;  %s1626_s4 = inlined_call_operand.vmem [shape: f32[24,128], index: 4, kind: input, shape index: {}]   ;;  %s1627_s2 = inlined_call_operand.vmem [shape: f32[128,24], index: 2, kind: input, shape index: {}]   ;;  %s1628_s5 = inlined_call_operand.vmem [shape: f32[1,128], index: 5, kind: input, shape index: {}]   ;;  %s1629_s6 = inlined_call_operand.vmem [shape: f32[128,128], index: 6, kind: output, shape index: {}]  }
   0x1   :  { %v41_v0 = vld [vmem:[%s1623_s3 + $0x10] sm:$0xff]  ;;  %v40_v1 = vld [vmem:[%s1623_s3 + $0x8] sm:$0xff]  ;;  %v23_v2 = vld [vmem:[%s1624_s0] sm:$0xff] }
   0x2   :  { %1027 = vmatprep.subr.mxu0 %v41_v0  ;;  %v39_v3 = vld [vmem:[%s1623_s3] sm:$0xff]  ;;  %1033 = vmatprep.mubr.msk.f32.mxu0 %vm42_vm0, %v23_v2  ;;  %v24_v4 = vld [vmem:[%s1624_s0 + $0x8] sm:$0xff]  ;;  %v25_v5 = vld [vmem:[%s1624_s0 + $0x10] sm:$0xff] }
   0x3   :  { %1028 = vmatpush3.msra.mxu0 %v41_v0  ;;  %v251_v6 = vld [vmem:[%s1625_s1 + $0x78] sm:$0xff]  ;;  %v250_v7 = vld [vmem:[%s1625_s1 + $0x70] sm:$0xff]  ;;  %v27_v9 = vld [vmem:[%s1624_s0 + $0x20] sm:$0xff] }
   0x4   :  { %1029 = vmatprep.subr.mxu0 %v40_v1  ;;  %1057 = vmatprep.subr.msk.mxu1 %vm42_vm0, %v251_v6  ;;  %v26_v8 = vld [vmem:[%s1624_s0 + $0x18] sm:$0xff]  ;;  %v249_v10 = vld [vmem:[%s1625_s1 + $0x68] sm:$0xff]  ;;  %v29_v12 = vld [vmem:[%s1624_s0 + $0x30] sm:$0xff] }
   0x5   :  { %1030 = vmatpush3.msra.mxu0 %v40_v1  ;;  %1058 = vmatpush3.xpose.msk.msra.mxu1 %vm42_vm0, %v251_v6  ;;  %v28_v11 = vld [vmem:[%s1624_s0 + $0x28] sm:$0xff]  ;;  %v248_v13 = vld [vmem:[%s1625_s1 + $0x60] sm:$0xff]  ;;  %v30_v14 = vld [vmem:[%s1624_s0 + $0x38] sm:$0xff] }
   0x6   :  { %1031 = vmatprep.subr.mxu0 %v39_v3  ;;  %1059 = vmatprep.subr.msk.mxu1 %vm42_vm0, %v250_v7  ;;  %v31_v15 = vld [vmem:[%s1624_s0 + $0x40] sm:$0xff]  ;;  %v247_v16 = vld [vmem:[%s1625_s1 + $0x58] sm:$0xff]  ;;  %v32_v17 = vld [vmem:[%s1624_s0 + $0x48] sm:$0xff] }
   0x7   :  { %1032 = vmatpush3.msra.mxu0 %v39_v3  ;;  %v33_v18 = vld [vmem:[%s1624_s0 + $0x50] sm:$0xff]  ;;  %v34_v20 = vld [vmem:[%s1624_s0 + $0x58] sm:$0xff]  ;;  %v35_v21 = vld [vmem:[%s1624_s0 + $0x60] sm:$0xff] }
   0x8   :  { %1034 = vmatmul.mubr.msk.f32.vlgmr.msra.gmra.mxu0 %vm42_vm0, %v24_v4  ;;  %v246_v19 = vld [vmem:[%s1625_s1 + $0x50] sm:$0xff]  ;;  %v245_v22 = vld [vmem:[%s1625_s1 + $0x48] sm:$0xff]  ;;  %v244_v25 = vld [vmem:[%s1625_s1 + $0x40] sm:$0xff] }
   0x9   :  { %1036 = vmatprep.mubr.msk.f32.mxu0 %vm42_vm0, %v25_v5  ;;  %1060 = vmatpush3.xpose.msk.msra.mxu1 %vm42_vm0, %v250_v7  ;;  %v36_v23 = vld [vmem:[%s1624_s0 + $0x68] sm:$0xff]  ;;  %v37_v24 = vld [vmem:[%s1624_s0 + $0x70] sm:$0xff]  ;;  %v38_v26 = vld [vmem:[%s1624_s0 + $0x78] sm:$0xff] }
   0xa   :  { %1061 = vmatprep.subr.msk.mxu1 %vm42_vm0, %v249_v10  ;;  %v243_v27 = vld [vmem:[%s1625_s1 + $0x38] sm:$0xff]  ;;  %v242_v28 = vld [vmem:[%s1625_s1 + $0x30] sm:$0xff]  ;;  %v241_v29 = vld [vmem:[%s1625_s1 + $0x28] sm:$0xff] }
   0xb   :  { %v240_v30 = vld [vmem:[%s1625_s1 + $0x20] sm:$0xff]  ;;  %v239_v31 = vld [vmem:[%s1625_s1 + $0x18] sm:$0xff]  ;;  %v238_v32 = vld [vmem:[%s1625_s1 + $0x10] sm:$0xff] }
   0xc   :  { %1037 = vmatmul.mubr.msk.f32.gmra.mxu0 %vm42_vm0, %v26_v8  ;;  %v237_v33 = vld [vmem:[%s1625_s1 + $0x8] sm:$0xff]  ;;  %v236_v34 = vld [vmem:[%s1625_s1] sm:$0xff]  ;;  %v646_v35 = vld [vmem:[%s1626_s4 + $0x10] sm:$0xff] }
   0xd   :  { %1039 = vmatprep.mubr.msk.f32.mxu0 %vm42_vm0, %v27_v9  ;;  %1062 = vmatpush3.xpose.msk.msra.mxu1 %vm42_vm0, %v249_v10  ;;  %v645_v36 = vld [vmem:[%s1626_s4 + $0x8] sm:$0xff]  ;;  %v628_v37 = vld [vmem:[%s1627_s2] sm:$0xff]  ;;  %v630_v40 = vld [vmem:[%s1627_s2 + $0x10] sm:$0xff] }
   0xe   :  { %1063 = vmatprep.subr.msk.mxu1 %vm42_vm0, %v248_v13  ;;  %1113 = vmatprep.subr.mxu0 %v646_v35  ;;  %v644_v38 = vld [vmem:[%s1626_s4] sm:$0xff]  ;;  %v629_v39 = vld [vmem:[%s1627_s2 + $0x8] sm:$0xff]  ;;  %v631_v41 = vld [vmem:[%s1627_s2 + $0x18] sm:$0xff] }
   0xf   :  { %1114 = vmatpush3.msra.mxu0 %v646_v35  ;;  %v632_v42 = vld [vmem:[%s1627_s2 + $0x20] sm:$0xff]  ;;  %v633_v43 = vld [vmem:[%s1627_s2 + $0x28] sm:$0xff]  ;;  %v634_v44 = vld [vmem:[%s1627_s2 + $0x30] sm:$0xff] }
  0x10   :  { %1040 = vmatmul.mubr.msk.f32.gmra.mxu0 %vm42_vm0, %v28_v11  ;;  %1115 = vmatprep.subr.mxu0 %v645_v36  ;;  %v635_v45 = vld [vmem:[%s1627_s2 + $0x38] sm:$0xff]  ;;  %v636_v46 = vld [vmem:[%s1627_s2 + $0x40] sm:$0xff]  ;;  %v637_v47 = vld [vmem:[%s1627_s2 + $0x48] sm:$0xff] }
  0x11   :  { %1042 = vmatprep.mubr.msk.f32.mxu0 %vm42_vm0, %v29_v12  ;;  %1064 = vmatpush3.xpose.msk.msra.mxu1 %vm42_vm0, %v248_v13  ;;  %v638_v48 = vld [vmem:[%s1627_s2 + $0x50] sm:$0xff]  ;;  %v639_v49 = vld [vmem:[%s1627_s2 + $0x58] sm:$0xff]  ;;  %v640_v50 = vld [vmem:[%s1627_s2 + $0x60] sm:$0xff] }
  0x12   :  { %1065 = vmatprep.subr.msk.mxu1 %vm42_vm0, %v247_v16  ;;  %1116 = vmatpush3.msra.mxu0 %v645_v36  ;;  %v641_v51 = vld [vmem:[%s1627_s2 + $0x68] sm:$0xff]  ;;  %v642_v52 = vld [vmem:[%s1627_s2 + $0x70] sm:$0xff]  ;;  %v643_v53 = vld [vmem:[%s1627_s2 + $0x78] sm:$0xff] }
  0x13   :  { %1117 = vmatprep.subr.mxu0 %v644_v38  ;;  %v908_v6 = vld [vmem:[%s1628_s5] ss:$0 sm:$0xff] }
  0x14   :  { %1043 = vmatmul.mubr.msk.f32.gmra.mxu0 %vm42_vm0, %v30_v14 }
  0x15   :  { %1045 = vmatprep.mubr.msk.f32.mxu0 %vm42_vm0, %v31_v15  ;;  %1066 = vmatpush3.xpose.msk.msra.mxu1 %vm42_vm0, %v247_v16 }
  0x16   :  { %1067 = vmatprep.subr.msk.mxu1 %vm42_vm0, %v246_v19  ;;  %1118 = vmatpush3.msra.mxu0 %v644_v38 }
  0x18   :  { %1046 = vmatmul.mubr.msk.f32.gmra.mxu0 %vm42_vm0, %v32_v17 }
  0x19   :  { %1048 = vmatprep.mubr.msk.f32.mxu0 %vm42_vm0, %v33_v18  ;;  %1068 = vmatpush3.xpose.msk.msra.mxu1 %vm42_vm0, %v246_v19 }
  0x1a   :  { %1069 = vmatprep.subr.msk.mxu1 %vm42_vm0, %v245_v22 }
  0x1c   :  { %1049 = vmatmul.mubr.msk.f32.gmra.mxu0 %vm42_vm0, %v34_v20 }
  0x1d   :  { %1051 = vmatprep.mubr.msk.f32.mxu0 %vm42_vm0, %v35_v21  ;;  %1070 = vmatpush3.xpose.msk.msra.mxu1 %vm42_vm0, %v245_v22 }
  0x1e   :  { %1071 = vmatprep.subr.msk.mxu1 %vm42_vm0, %v244_v25 }
  0x20   :  { %1052 = vmatmul.mubr.msk.f32.gmra.mxu0 %vm42_vm0, %v36_v23 }
  0x21   :  { %1054 = vmatprep.mubr.msk.f32.mxu0 %vm42_vm0, %v37_v24  ;;  %1072 = vmatpush3.xpose.msk.msra.mxu1 %vm42_vm0, %v244_v25 }
  0x22   :  { %1073 = vmatprep.subr.msk.mxu1 %vm42_vm0, %v243_v27 }
  0x24   :  { %1055 = vmatmul.mubr.msk.f32.gmra.mxu0 %vm42_vm0, %v38_v26 }
  0x25   :  { %1074 = vmatpush3.xpose.msk.msra.mxu1 %vm42_vm0, %v243_v27  ;;  %1119 = vmatprep.mubr.msk.f32.mxu0 %vm42_vm0, %v628_v37 }
  0x26   :  { %1075 = vmatprep.subr.msk.mxu1 %vm42_vm0, %v242_v28 }
  0x28   :  { %1120 = vmatmul.mubr.msk.f32.vlgmr.msra.gmra.mxu0 %vm42_vm0, %v629_v39 }
  0x29   :  { %1076 = vmatpush3.xpose.msk.msra.mxu1 %vm42_vm0, %v242_v28  ;;  %1122 = vmatprep.mubr.msk.f32.mxu0 %vm42_vm0, %v630_v40 }
  0x2a   :  { %1077 = vmatprep.subr.msk.mxu1 %vm42_vm0, %v241_v29 }
  0x2c   :  { %1123 = vmatmul.mubr.msk.f32.gmra.mxu0 %vm42_vm0, %v631_v41 }
  0x2d   :  { %1078 = vmatpush3.xpose.msk.msra.mxu1 %vm42_vm0, %v241_v29  ;;  %1125 = vmatprep.mubr.msk.f32.mxu0 %vm42_vm0, %v632_v42 }
  0x2e   :  { %1079 = vmatprep.subr.msk.mxu1 %vm42_vm0, %v240_v30 }
  0x30   :  { %1126 = vmatmul.mubr.msk.f32.gmra.mxu0 %vm42_vm0, %v633_v43 }
  0x31   :  { %1080 = vmatpush3.xpose.msk.msra.mxu1 %vm42_vm0, %v240_v30  ;;  %1128 = vmatprep.mubr.msk.f32.mxu0 %vm42_vm0, %v634_v44 }
  0x32   :  { %1081 = vmatprep.subr.msk.mxu1 %vm42_vm0, %v239_v31 }
  0x34   :  { %1129 = vmatmul.mubr.msk.f32.gmra.mxu0 %vm42_vm0, %v635_v45 }
  0x35   :  { %1082 = vmatpush3.xpose.msk.msra.mxu1 %vm42_vm0, %v239_v31  ;;  %1131 = vmatprep.mubr.msk.f32.mxu0 %vm42_vm0, %v636_v46 }
  0x36   :  { %1083 = vmatprep.subr.msk.mxu1 %vm42_vm0, %v238_v32 }
  0x38   :  { %1132 = vmatmul.mubr.msk.f32.gmra.mxu0 %vm42_vm0, %v637_v47 }
  0x39   :  { %1084 = vmatpush3.xpose.msk.msra.mxu1 %vm42_vm0, %v238_v32  ;;  %1134 = vmatprep.mubr.msk.f32.mxu0 %vm42_vm0, %v638_v48 }
  0x3a   :  { %1085 = vmatprep.subr.msk.mxu1 %vm42_vm0, %v237_v33 }
  0x3c   :  { %1135 = vmatmul.mubr.msk.f32.gmra.mxu0 %vm42_vm0, %v639_v49 }
  0x3d   :  { %1086 = vmatpush3.xpose.msk.msra.mxu1 %vm42_vm0, %v237_v33  ;;  %1137 = vmatprep.mubr.msk.f32.mxu0 %vm42_vm0, %v640_v50 }
  0x3e   :  { %1087 = vmatprep.subr.msk.mxu1 %vm42_vm0, %v236_v34 }
  0x40   :  { %1138 = vmatmul.mubr.msk.f32.gmra.mxu0 %vm42_vm0, %v641_v51 }
  0x41   :  { %1088 = vmatpush3.xpose.msk.msra.mxu1 %vm42_vm0, %v236_v34  ;;  %1140 = vmatprep.mubr.msk.f32.mxu0 %vm42_vm0, %v642_v52 }
  0x44   :  { %1141 = vmatmul.mubr.msk.f32.gmra.mxu0 %vm42_vm0, %v643_v53 }
  0xc8   :  { %v1035_v54 = vpop.f32.mrf.mxu0 }
  0xca   :  { %v157_v55 = vpop.f32.mrf.mxu0 }
  0xcb   :  { %1089 = vmatprep.mubr.msk.f32.mxu1 %vm42_vm0, %v157_v55 }
  0xcc   :  { %v1038_v56 = vpop.f32.mrf.mxu0  ;;  %1090 = vmatmul.mubr.msk.f32.vlgmr.msra.gmra.mxu1 %vm42_vm0, %v1035_v54 }
  0xce   :  { %v167_v57 = vpop.f32.mrf.mxu0 }
  0xcf   :  { %1092 = vmatprep.mubr.msk.f32.mxu1 %vm42_vm0, %v167_v57 }
  0xd0   :  { %v1041_v58 = vpop.f32.mrf.mxu0  ;;  %1093 = vmatmul.mubr.msk.f32.gmra.mxu1 %vm42_vm0, %v1038_v56 }
  0xd2   :  { %v177_v59 = vpop.f32.mrf.mxu0 }
  0xd3   :  { %1095 = vmatprep.mubr.msk.f32.mxu1 %vm42_vm0, %v177_v59 }
  0xd4   :  { %v1044_v60 = vpop.f32.mrf.mxu0  ;;  %1096 = vmatmul.mubr.msk.f32.gmra.mxu1 %vm42_vm0, %v1041_v58 }
  0xd6   :  { %v187_v61 = vpop.f32.mrf.mxu0 }
  0xd7   :  { %1098 = vmatprep.mubr.msk.f32.mxu1 %vm42_vm0, %v187_v61 }
  0xd8   :  { %v1047_v62 = vpop.f32.mrf.mxu0  ;;  %1099 = vmatmul.mubr.msk.f32.gmra.mxu1 %vm42_vm0, %v1044_v60 }
  0xda   :  { %v197_v63 = vpop.f32.mrf.mxu0 }
  0xdb   :  { %1101 = vmatprep.mubr.msk.f32.mxu1 %vm42_vm0, %v197_v63 }
  0xdc   :  { %v1050_v0 = vpop.f32.mrf.mxu0  ;;  %1102 = vmatmul.mubr.msk.f32.gmra.mxu1 %vm42_vm0, %v1047_v62 }
  0xde   :  { %v207_v1 = vpop.f32.mrf.mxu0 }
  0xdf   :  { %1104 = vmatprep.mubr.msk.f32.mxu1 %vm42_vm0, %v207_v1 }
  0xe0   :  { %v1053_v2 = vpop.f32.mrf.mxu0  ;;  %1105 = vmatmul.mubr.msk.f32.gmra.mxu1 %vm42_vm0, %v1050_v0 }
  0xe2   :  { %v217_v3 = vpop.f32.mrf.mxu0 }
  0xe3   :  { %1107 = vmatprep.mubr.msk.f32.mxu1 %vm42_vm0, %v217_v3 }
  0xe4   :  { %v1056_v4 = vpop.f32.mrf.mxu0  ;;  %1108 = vmatmul.mubr.msk.f32.gmra.mxu1 %vm42_vm0, %v1053_v2 }
  0xe6   :  { %v227_v5 = vpop.f32.mrf.mxu0 }
  0xe7   :  { %1110 = vmatprep.mubr.msk.f32.mxu1 %vm42_vm0, %v227_v5 }
  0xe8   :  { %1111 = vmatmul.mubr.msk.f32.gmra.mxu1 %vm42_vm0, %v1056_v4 }
 0x18c   :  { %v1091_v7 = vpop.f32.mrf.mxu1 }
 0x18d   :  { %v427_v8 = vadd.f32 %v1091_v7, %v908_v6 }
 0x18e   :  { %v421_v9 = vpop.f32.mrf.mxu1 }
 0x18f   :  { %502 = vmax.xlane.f32.xlu0 %v427_v8  ;;  %v422_v11 = vadd.f32 %v908_v6, %v421_v9 }
 0x190   :  { %v1094_v10 = vpop.f32.mrf.mxu1 }
 0x191   :  { %v437_v12 = vadd.f32 %v1094_v10, %v908_v6 }
 0x192   :  { %v431_v13 = vpop.f32.mrf.mxu1 }
 0x193   :  { %500 = vmax.xlane.f32.xlu0 %v422_v11  ;;  %506 = vmax.xlane.f32.xlu1 %v437_v12  ;;  %v432_v15 = vadd.f32 %v908_v6, %v431_v13 }
 0x194   :  { %v1097_v14 = vpop.f32.mrf.mxu1 }
 0x195   :  { %v447_v19 = vadd.f32 %v1097_v14, %v908_v6 }
 0x196   :  { %v441_v16 = vpop.f32.mrf.mxu1 }
 0x197   :  { %v442_v17 = vadd.f32 %v908_v6, %v441_v16  ;;  %504 = vmax.xlane.f32.xlu1 %v432_v15 }
 0x198   :  { %v1100_v18 = vpop.f32.mrf.mxu1 }
 0x199   :  { %508 = vmax.xlane.f32.xlu0 %v442_v17  ;;  %v457_v23 = vadd.f32 %v1100_v18, %v908_v6 }
 0x19a   :  { %v451_v20 = vpop.f32.mrf.mxu1 }
 0x19b   :  { %v452_v21 = vadd.f32 %v908_v6, %v451_v20  ;;  %510 = vmax.xlane.f32.xlu1 %v447_v19 }
 0x19c   :  { %v1103_v22 = vpop.f32.mrf.mxu1 }
 0x19d   :  { %512 = vmax.xlane.f32.xlu0 %v452_v21  ;;  %v467_v27 = vadd.f32 %v1103_v22, %v908_v6 }
 0x19e   :  { %v461_v24 = vpop.f32.mrf.mxu1 }
 0x19f   :  { %v462_v25 = vadd.f32 %v908_v6, %v461_v24  ;;  %514 = vmax.xlane.f32.xlu1 %v457_v23 }
 0x1a0   :  { %v1106_v26 = vpop.f32.mrf.mxu1 }
 0x1a1   :  { %516 = vmax.xlane.f32.xlu0 %v462_v25  ;;  %v1489_v31 = vadd.f32 %v1106_v26, %v908_v6 }
 0x1a2   :  { %v471_v28 = vpop.f32.mrf.mxu1 }
 0x1a3   :  { %v1487_v29 = vadd.f32 %v908_v6, %v471_v28  ;;  %518 = vmax.xlane.f32.xlu1 %v467_v27 }
 0x1a4   :  { %v1109_v30 = vpop.f32.mrf.mxu1 }
 0x1a5   :  { %520 = vmax.xlane.f32.xlu0 %v1487_v29  ;;  %v1495_v35 = vadd.f32 %v1109_v30, %v908_v6 }
 0x1a6   :  { %v481_v32 = vpop.f32.mrf.mxu1 }
 0x1a7   :  { %v1492_v33 = vadd.f32 %v908_v6, %v481_v32  ;;  %522 = vmax.xlane.f32.xlu1 %v1489_v31 }
 0x1a8   :  { %v1112_v34 = vpop.f32.mrf.mxu1 }
 0x1a9   :  { %524 = vmax.xlane.f32.xlu0 %v1492_v33  ;;  %v1501_v38 = vadd.f32 %v1112_v34, %v908_v6 }
 0x1aa   :  { %v491_v36 = vpop.f32.mrf.mxu1 }
 0x1ab   :  { %v1498_v37 = vadd.f32 %v908_v6, %v491_v36  ;;  %526 = vmax.xlane.f32.xlu1 %v1495_v35 }
 0x1ad   :  { %528 = vmax.xlane.f32.xlu0 %v1498_v37 }
 0x1af   :  { %530 = vmax.xlane.f32.xlu1 %v1501_v38 }
 0x218   :  { %v503_v39 = vpop.xlane.xlu0 %502 }
 0x219   :  { %v533_v40 = vsub.f32 %v427_v8, %v503_v39  ;;  %v1121_v39 = vpop.f32.mrf.mxu0 }
 0x21b   :  { %v550_v41 = vmul.f32 1.442695, %v533_v40  ;;  %v761_v40 = vpop.f32.mrf.mxu0 }
 0x21c   :  { %v501_v42 = vpop.xlane.xlu0 %500  ;;  %v507_v43 = vpop.xlane.xlu1 %506 }
 0x21d   :  { %1143 = vpow2.f32 %v550_v41  ;;  %v532_v44 = vsub.f32 %v422_v11, %v501_v42  ;;  %v535_v45 = vsub.f32 %v437_v12, %v507_v43  ;;  %v1124_v41 = vpop.f32.mrf.mxu0 }
 0x21f   :  { %v548_v46 = vmul.f32 1.442695, %v532_v44  ;;  %v554_v47 = vmul.f32 1.442695, %v535_v45  ;;  %v771_v42 = vpop.f32.mrf.mxu0 }
 0x220   :  { %v505_v48 = vpop.xlane.xlu1 %504 }
 0x221   :  { %1145 = vpow2.f32 %v548_v46  ;;  %v534_v49 = vsub.f32 %v432_v15, %v505_v48  ;;  %v1127_v43 = vpop.f32.mrf.mxu0 }
 0x222   :  { %1147 = vpow2.f32 %v554_v47  ;;  %v509_v50 = vpop.xlane.xlu0 %508 }
 0x223   :  { %v552_v51 = vmul.f32 1.442695, %v534_v49  ;;  %v536_v52 = vsub.f32 %v442_v17, %v509_v50  ;;  %v781_v45 = vpop.f32.mrf.mxu0 }
 0x224   :  { %v511_v53 = vpop.xlane.xlu1 %510 }
 0x225   :  { %1149 = vpow2.f32 %v552_v51  ;;  %v556_v54 = vmul.f32 1.442695, %v536_v52  ;;  %v537_v55 = vsub.f32 %v447_v19, %v511_v53  ;;  %v1130_v48 = vpop.f32.mrf.mxu0 }
 0x226   :  { %v513_v56 = vpop.xlane.xlu0 %512 }
 0x227   :  { %v558_v57 = vmul.f32 1.442695, %v537_v55  ;;  %v538_v58 = vsub.f32 %v452_v21, %v513_v56  ;;  %1151 = vpow2.f32 %v556_v54  ;;  %v791_v50 = vpop.f32.mrf.mxu0 }
 0x228   :  { %v515_v59 = vpop.xlane.xlu1 %514 }
 0x229   :  { %1153 = vpow2.f32 %v558_v57  ;;  %v560_v60 = vmul.f32 1.442695, %v538_v58  ;;  %v539_v61 = vsub.f32 %v457_v23, %v515_v59  ;;  %v1133_v55 = vpop.f32.mrf.mxu0 }
 0x22a   :  { %v1505_v62 = vpop.eup %1143  ;;  %v517_v63 = vpop.xlane.xlu0 %516 }
 0x22b   :  { %v562_v0 = vmul.f32 1.442695, %v539_v61  ;;  %v540_v1 = vsub.f32 %v462_v25, %v517_v63  ;;  %582 = vadd.xlane.f32.xlu1 %v1505_v62  ;;  %1155 = vpow2.f32 %v560_v60  ;;  %v841_v53 = vmul.f32 %v1505_v62, %v1121_v39  ;;  %v801_v62 = vpop.f32.mrf.mxu0 }
 0x22c   :  { %v519_v2 = vpop.xlane.xlu1 %518 }
 0x22d   :  { %1157 = vpow2.f32 %v562_v0  ;;  %v564_v3 = vmul.f32 1.442695, %v540_v1  ;;  %v541_v4 = vsub.f32 %v467_v27, %v519_v2 }
 0x22e   :  { %v1508_v5 = vpop.eup %1145  ;;  %v521_v6 = vpop.xlane.xlu0 %520 }
 0x22f   :  { %v1510_v7 = vpop.eup %1147  ;;  %v566_v8 = vmul.f32 1.442695, %v541_v4  ;;  %v542_v9 = vsub.f32 %v1487_v29, %v521_v6  ;;  %580 = vadd.xlane.f32.xlu0 %v1508_v5  ;;  %1159 = vpow2.f32 %v564_v3  ;;  %v840_v59 = vmul.f32 %v1508_v5, %v761_v40  ;;  %v1136_v6 = vpop.f32.mrf.mxu0 }
 0x230   :  { %586 = vadd.xlane.f32.xlu1 %v1510_v7  ;;  %v523_v10 = vpop.xlane.xlu1 %522  ;;  %v843_v61 = vmul.f32 %v1510_v7, %v1124_v41 }
 0x231   :  { %1161 = vpow2.f32 %v566_v8  ;;  %v568_v11 = vmul.f32 1.442695, %v542_v9  ;;  %v543_v12 = vsub.f32 %v1489_v31, %v523_v10 }
 0x232   :  { %v1516_v13 = vpop.eup %1149  ;;  %v525_v14 = vpop.xlane.xlu0 %524 }
 0x233   :  { %v570_v15 = vmul.f32 1.442695, %v543_v12  ;;  %v544_v16 = vsub.f32 %v1492_v33, %v525_v14  ;;  %584 = vadd.xlane.f32.xlu0 %v1516_v13  ;;  %1163 = vpow2.f32 %v568_v11  ;;  %v842_v4 = vmul.f32 %v1516_v13, %v771_v42  ;;  %v811_v14 = vpop.f32.mrf.mxu0 }
 0x234   :  { %v527_v17 = vpop.xlane.xlu1 %526  ;;  %v1520_v18 = vpop.eup %1151 }
 0x235   :  { %1165 = vpow2.f32 %v570_v15  ;;  %v572_v19 = vmul.f32 1.442695, %v544_v16  ;;  %v545_v20 = vsub.f32 %v1495_v35, %v527_v17  ;;  %v844_v12 = vmul.f32 %v1520_v18, %v781_v45 }
 0x236   :  { %v1523_v21 = vpop.eup %1153  ;;  %v529_v22 = vpop.xlane.xlu0 %528 }
 0x237   :  { %v574_v23 = vmul.f32 1.442695, %v545_v20  ;;  %v546_v24 = vsub.f32 %v1498_v37, %v529_v22  ;;  %590 = vadd.xlane.f32.xlu1 %v1523_v21  ;;  %588 = vadd.xlane.f32.xlu0 %v1520_v18  ;;  %1167 = vpow2.f32 %v572_v19  ;;  %v845_v10 = vmul.f32 %v1523_v21, %v1127_v43 }
 0x238   :  { %v531_v25 = vpop.xlane.xlu1 %530  ;;  %v1528_v26 = vpop.eup %1155 }
 0x239   :  { %1169 = vpow2.f32 %v574_v23  ;;  %v576_v27 = vmul.f32 1.442695, %v546_v24  ;;  %v547_v28 = vsub.f32 %v1501_v38, %v531_v25  ;;  %v846_v22 = vmul.f32 %v1528_v26, %v791_v50  ;;  %v1139_v23 = vpop.f32.mrf.mxu0 }
 0x23a   :  { %v1531_v29 = vpop.eup %1157 }
 0x23b   :  { %v578_v30 = vmul.f32 1.442695, %v547_v28  ;;  %594 = vadd.xlane.f32.xlu1 %v1531_v29  ;;  %592 = vadd.xlane.f32.xlu0 %v1528_v26  ;;  %1171 = vpow2.f32 %v576_v27  ;;  %v847_v20 = vmul.f32 %v1531_v29, %v1130_v48  ;;  %v821_v40 = vpop.f32.mrf.mxu0 }
 0x23c   :  { %v1535_v31 = vpop.eup %1159 }
 0x23d   :  { %1173 = vpow2.f32 %v578_v30  ;;  %v848_v26 = vmul.f32 %v1535_v31, %v801_v62  ;;  %v1142_v45 = vpop.f32.mrf.mxu0 }
 0x23e   :  { %v1537_v32 = vpop.eup %1161 }
 0x23f   :  { %598 = vadd.xlane.f32.xlu1 %v1537_v32  ;;  %596 = vadd.xlane.f32.xlu0 %v1535_v31  ;;  %v849_v29 = vmul.f32 %v1537_v32, %v1133_v55  ;;  %v831_v50 = vpop.f32.mrf.mxu0 }
 0x240   :  { %v1541_v33 = vpop.eup %1163 }
 0x242   :  { %v1543_v34 = vpop.eup %1165 }
 0x243   :  { %602 = vadd.xlane.f32.xlu1 %v1543_v34  ;;  %600 = vadd.xlane.f32.xlu0 %v1541_v33  ;;  %v851_v43 = vmul.f32 %v1543_v34, %v1136_v6 }
 0x244   :  { %v1547_v35 = vpop.eup %1167 }
 0x246   :  { %v1549_v36 = vpop.eup %1169 }
 0x247   :  { %606 = vadd.xlane.f32.xlu1 %v1549_v36  ;;  %604 = vadd.xlane.f32.xlu0 %v1547_v35  ;;  %v853_v48 = vmul.f32 %v1549_v36, %v1139_v23 }
 0x248   :  { %v1553_v37 = vpop.eup %1171 }
 0x24a   :  { %v1555_v38 = vpop.eup %1173 }
 0x24b   :  { %610 = vadd.xlane.f32.xlu1 %v1555_v38  ;;  %608 = vadd.xlane.f32.xlu0 %v1553_v37 }
 0x2b4   :  { %v583_v44 = vpop.xlane.xlu1 %582 }
 0x2b5   :  { %1175 = vrcp.f32 %v583_v44  ;;  %v850_v44 = vmul.f32 %v1541_v33, %v811_v14 }
 0x2b8   :  { %v581_v46 = vpop.xlane.xlu0 %580 }
 0x2b9   :  { %v587_v47 = vpop.xlane.xlu1 %586  ;;  %1177 = vrcp.f32 %v581_v46 }
 0x2ba   :  { %1179 = vrcp.f32 %v587_v47 }
 0x2bc   :  { %v585_v49 = vpop.xlane.xlu0 %584 }
 0x2bd   :  { %1181 = vrcp.f32 %v585_v49  ;;  %v852_v49 = vmul.f32 %v1547_v35, %v821_v40 }
 0x2c0   :  { %v591_v51 = vpop.xlane.xlu1 %590  ;;  %v589_v52 = vpop.xlane.xlu0 %588 }
 0x2c1   :  { %1183 = vrcp.f32 %v591_v51 }
 0x2c2   :  { %v1176_v54 = vpop.eup %1175  ;;  %1185 = vrcp.f32 %v589_v52 }
 0x2c3   :  { %v857_v56 = vmul.f32 %v1176_v54, %v841_v53  ;;  %v855_v53 = vmul.f32 %v1555_v38, %v1142_v45  ;;  %v854_v54 = vmul.f32 %v1553_v37, %v831_v50 }
 0x2c4   :  { %v595_v57 = vpop.xlane.xlu1 %594  ;;  %v593_v58 = vpop.xlane.xlu0 %592 }
 0x2c5   :  { %873 = vst [vmem:[%s1629_s6 + $0x8] sm:$0xff] %v857_v56  ;;  %1187 = vrcp.f32 %v595_v57 }
 0x2c6   :  { %v1178_v60 = vpop.eup %1177  ;;  %1189 = vrcp.f32 %v593_v58 }
 0x2c7   :  { %v1180_v63 = vpop.eup %1179  ;;  %v856_v0 = vmul.f32 %v1178_v60, %v840_v59 }
 0x2c8   :  { %v859_v1 = vmul.f32 %v1180_v63, %v843_v61  ;;  %v599_v2 = vpop.xlane.xlu1 %598  ;;  %v597_v3 = vpop.xlane.xlu0 %596 }
 0x2c9   :  { %872 = vst [vmem:[%s1629_s6] sm:$0xff] %v856_v0  ;;  %1191 = vrcp.f32 %v599_v2 }
 0x2ca   :  { %v1182_v5 = vpop.eup %1181  ;;  %875 = vst [vmem:[%s1629_s6 + $0x18] sm:$0xff] %v859_v1  ;;  %1193 = vrcp.f32 %v597_v3 }
 0x2cb   :  { %v858_v7 = vmul.f32 %v1182_v5, %v842_v4 }
 0x2cc   :  { %v603_v8 = vpop.xlane.xlu1 %602  ;;  %v601_v9 = vpop.xlane.xlu0 %600 }
 0x2cd   :  { %874 = vst [vmem:[%s1629_s6 + $0x10] sm:$0xff] %v858_v7  ;;  %1195 = vrcp.f32 %v603_v8 }
 0x2ce   :  { %v1184_v11 = vpop.eup %1183  ;;  %1197 = vrcp.f32 %v601_v9 }
 0x2cf   :  { %v1186_v13 = vpop.eup %1185  ;;  %v861_v15 = vmul.f32 %v1184_v11, %v845_v10 }
 0x2d0   :  { %v860_v16 = vmul.f32 %v1186_v13, %v844_v12  ;;  %v607_v17 = vpop.xlane.xlu1 %606  ;;  %v605_v19 = vpop.xlane.xlu0 %604 }
 0x2d1   :  { %877 = vst [vmem:[%s1629_s6 + $0x28] sm:$0xff] %v861_v15  ;;  %1199 = vrcp.f32 %v607_v17 }
 0x2d2   :  { %v1188_v21 = vpop.eup %1187  ;;  %876 = vst [vmem:[%s1629_s6 + $0x20] sm:$0xff] %v860_v16  ;;  %1201 = vrcp.f32 %v605_v19 }
 0x2d3   :  { %v1190_v18 = vpop.eup %1189  ;;  %v863_v24 = vmul.f32 %v1188_v21, %v847_v20 }
 0x2d4   :  { %v862_v25 = vmul.f32 %v1190_v18, %v846_v22  ;;  %v611_v27 = vpop.xlane.xlu1 %610  ;;  %v609_v28 = vpop.xlane.xlu0 %608 }
 0x2d5   :  { %879 = vst [vmem:[%s1629_s6 + $0x38] sm:$0xff] %v863_v24  ;;  %1203 = vrcp.f32 %v611_v27 }
 0x2d6   :  { %v1192_v30 = vpop.eup %1191  ;;  %878 = vst [vmem:[%s1629_s6 + $0x30] sm:$0xff] %v862_v25  ;;  %1205 = vrcp.f32 %v609_v28 }
 0x2d7   :  { %v1194_v39 = vpop.eup %1193  ;;  %v865_v41 = vmul.f32 %v1192_v30, %v849_v29 }
 0x2d8   :  { %v864_v42 = vmul.f32 %v1194_v39, %v848_v26 }
 0x2d9   :  { %881 = vst [vmem:[%s1629_s6 + $0x48] sm:$0xff] %v865_v41 }
 0x2da   :  { %v1196_v32 = vpop.eup %1195  ;;  %880 = vst [vmem:[%s1629_s6 + $0x40] sm:$0xff] %v864_v42 }
 0x2db   :  { %v1198_v31 = vpop.eup %1197  ;;  %v867_v46 = vmul.f32 %v1196_v32, %v851_v43 }
 0x2dc   :  { %v866_v47 = vmul.f32 %v1198_v31, %v850_v44 }
 0x2dd   :  { %883 = vst [vmem:[%s1629_s6 + $0x58] sm:$0xff] %v867_v46 }
 0x2de   :  { %v1200_v34 = vpop.eup %1199  ;;  %882 = vst [vmem:[%s1629_s6 + $0x50] sm:$0xff] %v866_v47 }
 0x2df   :  { %v1202_v33 = vpop.eup %1201  ;;  %v869_v51 = vmul.f32 %v1200_v34, %v853_v48 }
 0x2e0   :  { %v868_v52 = vmul.f32 %v1202_v33, %v852_v49 }
 0x2e1   :  { %885 = vst [vmem:[%s1629_s6 + $0x68] sm:$0xff] %v869_v51 }
 0x2e2   :  { %v1204_v36 = vpop.eup %1203  ;;  %884 = vst [vmem:[%s1629_s6 + $0x60] sm:$0xff] %v868_v52 }
 0x2e3   :  { %v1206_v35 = vpop.eup %1205  ;;  %v871_v55 = vmul.f32 %v1204_v36, %v855_v53 }
 0x2e4   :  { %v870_v56 = vmul.f32 %v1206_v35, %v854_v54 }
 0x2e5   :  { %887 = vst [vmem:[%s1629_s6 + $0x78] sm:$0xff] %v871_v55 }
 0x2e6   :  { %886 = vst [vmem:[%s1629_s6 + $0x70] sm:$0xff] %v870_v56 }

</bundles_post_ra>
